<compile_context>
chip_gen: v7x
topology: tpu7x:2x2x1
jax: 0.10.0
libtpu: 0.0.40
codegen_flags: <defaults>
</compile_context>

<pallas_src>
import functools

import jax
import jax.numpy as jnp
import numpy as np
from jax.experimental import pallas as pl
from jax.experimental.pallas import tpu as pltpu


# ----------------------------- static helpers -------------------------------

def _ceil_div(a, b):
    return -(-a // b)


def _round_up(a, b):
    return _ceil_div(a, b) * b


def _norm_size(ps):
    if isinstance(ps, int):
        return ps, ps
    oh, ow = ps
    return int(oh), int(ow)


def _bin_bounds(in_size: int, out_size: int):
    """PyTorch adaptive-pool bin boundaries: [floor(i*I/O), ceil((i+1)*I/O))."""
    bounds = []
    for i in range(out_size):
        start = (i * in_size) // out_size
        end = -((-(i + 1) * in_size) // out_size)
        bounds.append((start, end))
    return bounds


def _build_bin_membership(H: int, W: int, sizes):
    """(NB, H*W) exact 0/1 membership matrix + (NB, 1) f32 1/bin_size vector.

    Row order matches torch: per pool size, (i, j) row-major, pool sizes
    concatenated in order (== flatten(2) then cat(dim=-1)).
    """
    rows, inv = [], []
    for oh, ow in sizes:
        for rs, re in _bin_bounds(H, oh):
            for cs, ce in _bin_bounds(W, ow):
                m = np.zeros((H, W), dtype=np.float32)
                m[rs:re, cs:ce] = 1.0
                rows.append(m.reshape(-1))
                inv.append(1.0 / float((re - rs) * (ce - cs)))
    return (np.stack(rows, axis=0),
            np.asarray(inv, dtype=np.float32).reshape(-1, 1))


# --------------------------------- kernel -----------------------------------

def _spp_pool_kernel(w_ref, inv_ref, x_ref, *out_refs,
                     compute_avg, compute_max, lane_dense, derive):
    # w_ref:   (NB, HW)  exact 0/1 bin membership in x's native dtype
    # inv_ref: (NB, 1)   f32 reciprocal bin sizes
    # x_ref:   (BC, HW)  one channel block, native dtype
    # out_refs: [avg?, max?] each (NB, BC) lane-dense (or (BC, NB) fallback)
    x = x_ref[...]
    w = w_ref[...]
    nb = w_ref.shape[0]
    oi = 0

    if compute_avg:
        avg_ref = out_refs[oi]
        oi += 1
        inv = inv_ref[...]                               # (NB, 1) f32
        if lane_dense:
            # Bin SUMS of every pool size in one MXU matmul, channel batch
            # folded into the lane dimension -> (NB, BC), f32 accumulation.
            sums = jax.lax.dot_general(
                w, x,
                dimension_numbers=(((1,), (1,)), ((), ())),   # contract HW
                preferred_element_type=jnp.float32)
            avg_ref[...] = (sums * inv).astype(avg_ref.dtype)
        else:
            sums = jax.lax.dot_general(
                x, w,
                dimension_numbers=(((1,), (1,)), ((), ())),
                preferred_element_type=jnp.float32)            # (BC, NB)
            avg_ref[...] = (sums * inv.T).astype(avg_ref.dtype)

    if compute_max:
        max_ref = out_refs[oi]
        neg = jnp.asarray(-jnp.inf, dtype=x.dtype)
        cols = [None] * nb
        # Bins computed by scanning x (statically unrolled; NB is tiny).
        # TODO(synk): on very large H*W, statically slice each bin's
        # contiguous row band before masking to cut VPU/XLU work further.
        for b in range(nb):
            if b in derive:
                continue
            mask = w[b:b + 1, :] > 0                     # (1, HW)
            cols[b] = jnp.max(jnp.where(mask, x, neg),   # (BC, 1)
                              axis=1, keepdims=True)
        # 1x1 levels: max over another level's bin maxes (covers all pixels).
        for b, src_rows in derive.items():
            acc = cols[src_rows[0]]
            for s in src_rows[1:]:
                acc = jnp.maximum(acc, cols[s])
            cols[b] = acc
        mx = jnp.concatenate(cols, axis=1)               # (BC, NB)
        if lane_dense:
            max_ref[...] = mx.T.astype(max_ref.dtype)    # (NB, BC) lane-dense
        else:
            max_ref[...] = mx.astype(max_ref.dtype)


# -------------------------------- wrapper ------------------------------------

@functools.partial(jax.jit, static_argnames=("pool_size", "mode", "single"))
def spp_forward(x, pool_size=(1, 2), mode="max", single=False, mix_weight=None):
    """Pallas equivalent of SPP.forward / SPP.forward_single.

    x: (N, C, H, W). Returns (pos_feature, ori_feature) each (N, C, sum(oh*ow))
    or a single tensor when single=True.
    """
    N, C, H, W = x.shape
    NC, HW = N * C, H * W
    sizes = tuple(_norm_size(p) for p in pool_size)
    nb = int(sum(oh * ow for oh, ow in sizes))

    compute_avg = mode in ("mean", "mix")
    compute_max = mode in ("max", "mix")
    if not (compute_avg or compute_max):
        raise ValueError(f"Unknown spp pooling mode: {mode}")

    # Exact 0/1 membership for the MXU (native dtype); f32 1/bin_size scale.
    w_np, inv_np = _build_bin_membership(H, W, sizes)
    w_arr = jnp.asarray(w_np, dtype=x.dtype)
    inv_arr = jnp.asarray(inv_np, dtype=jnp.float32)

    x2d = x.reshape(NC, HW)                              # free reshape of NCHW

    # Which 1x1 levels can be derived from another level's bin maxes.
    row_start, r = [], 0
    for oh, ow in sizes:
        row_start.append(r)
        r += oh * ow
    derive = {}
    if compute_max and len(sizes) > 1:
        src = max(range(len(sizes)), key=lambda i: sizes[i][0] * sizes[i][1])
        if sizes[src] != (1, 1):
            src_rows = tuple(range(row_start[src],
                                   row_start[src] + sizes[src][0] * sizes[src][1]))
            for li, (oh, ow) in enumerate(sizes):
                if li != src and (oh, ow) == (1, 1):
                    derive[row_start[li]] = src_rows

    # ---- channel-block sizing (generation-aware, with a safe fallback) ----
    itemsize = jnp.dtype(x.dtype).itemsize
    try:
        vmem_cap = int(getattr(pltpu.get_tpu_info(), "vmem_capacity_bytes",
                               64 * 1024 * 1024))
    except Exception:
        vmem_cap = 64 * 1024 * 1024                      # conservative (v7x/TC)
    budget_bytes = max(4 * 1024 * 1024,
                       min(12 * 1024 * 1024, vmem_cap // 8))   # per x block
    max_bc = max(8, budget_bytes // (HW * itemsize))

    if NC * HW * itemsize <= budget_bytes and NC <= 256:
        # Tiny problem: whole tensor in one block (block dims == array dims).
        bc = NC
        lane_dense = True
    elif max_bc >= 128:
        # Common path: 128-aligned channel blocks -> lane-dense output
        # stores; cap at ~half the rows so grid >= 2 (megacore on v7x).
        bc = min((max_bc // 128) * 128, _round_up(_ceil_div(NC, 2), 128))
        lane_dense = True
    else:
        # Very large H*W: small sublane-aligned blocks, channel-major output
        # blocks (last dim == full nb) to respect the (8,128) constraint.
        # TODO(synk): tile the H*W axis ('arbitrary' grid dim + accumulator
        # scratch) so huge spatial inputs also stay at the HBM roofline.
        bc = max(8, min((max_bc // 8) * 8, _round_up(_ceil_div(NC, 2), 8)))
        bc = min(bc, NC)
        lane_dense = False

    grid = (_ceil_div(NC, bc),)

    # Explicit scoped-VMEM limit: double-buffered x + w + outputs with slack.
    n_out = int(compute_avg) + int(compute_max)
    x_blk = bc * HW * itemsize
    w_blk = _round_up(nb, 8) * _round_up(HW, 128) * itemsize
    if lane_dense:
        o_blk = n_out * _round_up(nb, 8) * _round_up(bc, 128) * itemsize
    else:
        o_blk = n_out * _round_up(bc, 8) * 128 * itemsize
    est = 2 * (x_blk + w_blk + o_blk) + 2 * 1024 * 1024
    vmem_limit = int(min(max(32 * 1024 * 1024, est),
                         vmem_cap - 8 * 1024 * 1024))

    # ---- pallas_call ------------------------------------------------------
    if lane_dense:
        full_out, out_blk = (nb, NC), (nb, bc)
        out_idx = lambda i: (0, i)
    else:
        full_out, out_blk = (NC, nb), (bc, nb)
        out_idx = lambda i: (i, 0)

    out_shapes, out_specs = [], []
    if compute_avg:
        out_shapes.append(jax.ShapeDtypeStruct(full_out, x.dtype))
        out_specs.append(pl.BlockSpec(out_blk, out_idx))
    if compute_max:
        out_shapes.append(jax.ShapeDtypeStruct(full_out, x.dtype))
        out_specs.append(pl.BlockSpec(out_blk, out_idx))

    kernel = functools.partial(
        _spp_pool_kernel, compute_avg=compute_avg, compute_max=compute_max,
        lane_dense=lane_dense, derive=derive)

    results = pl.pallas_call(
        kernel,
        out_shape=tuple(out_shapes),
        grid_spec=pltpu.PrefetchScalarGridSpec(
            num_scalar_prefetch=0,
            grid=grid,
            in_specs=[
                pl.BlockSpec((nb, HW), lambda i: (0, 0)),   # 0/1 membership
                pl.BlockSpec((nb, 1), lambda i: (0, 0)),    # 1/bin_size (f32)
                pl.BlockSpec((bc, HW), lambda i: (i, 0)),   # channel block
            ],
            out_specs=out_specs,
        ),
        compiler_params=pltpu.CompilerParams(
            dimension_semantics=("parallel",),
            vmem_limit_bytes=vmem_limit,
        ),
    )(w_arr, inv_arr, x2d)

    if not isinstance(results, (tuple, list)):
        results = (results,)

    def _to_ncb(t):
        t2 = t.T if lane_dense else t                    # -> (NC, nb)
        return t2.reshape(N, C, nb)

    idx = 0
    avg_feat = max_feat = None
    if compute_avg:
        avg_feat = _to_ncb(results[idx])
        idx += 1
    if compute_max:
        max_feat = _to_ncb(results[idx])

    if mode == "max":
        pos = max_feat
        ori = pos
    elif mode == "mean":
        pos = avg_feat
        ori = pos
    else:  # mix
        # TODO(synk): the PyTorch module has one (identically-initialized)
        # weight vector per MixPool in the pyramid; a single shared vector is
        # used here (exact match for the default all-ones initialization).
        if mix_weight is None:
            mix_weight = jnp.ones((2 if single else 4,), jnp.float32)
        s = jax.nn.sigmoid(mix_weight)
        pos = avg_feat * s[0] + max_feat * s[1]
        ori = pos if single else (avg_feat * s[2] + max_feat * s[3])

    if single:
        return pos
    return pos, ori


# ------------------------------ pure-JAX reference ---------------------------

def _ref_spp_single(x, pool_size, op):
    feats = []
    H, W = x.shape[2], x.shape[3]
    for ps in pool_size:
        oh, ow = _norm_size(ps)
        for rs, re in _bin_bounds(H, oh):
            for cs, ce in _bin_bounds(W, ow):
                patch = x[:, :, rs:re, cs:ce].astype(jnp.float32)
                if op == "mean":
                    feats.append(jnp.mean(patch, axis=(2, 3)))
                else:
                    feats.append(jnp.max(patch, axis=(2, 3)))
    return jnp.stack(feats, axis=-1).astype(x.dtype)


# ----------------------------------- main ------------------------------------

if __name__ == "__main__":
    key = jax.random.PRNGKey(0)
    N, C, H, W = 2, 4, 16, 16
    pool_size = (1, 2)          # SPP default -> 1*1 + 2*2 = 5 features
    x = jax.random.normal(key, (N, C, H, W), dtype=jnp.float32)

    ref_max = _ref_spp_single(x, pool_size, "max")
    ref_mean = _ref_spp_single(x, pool_size, "mean")

    # Default SPP: mode='max', returns (pos_feature, ori_feature).
    pos, ori = spp_forward(x, pool_size=pool_size, mode="max", single=False)
    pos = jax.block_until_ready(pos)
    ori = jax.block_until_ready(ori)
    assert pos.shape == (N, C, 5) and ori.shape == (N, C, 5)
    np.testing.assert_allclose(np.asarray(pos), np.asarray(ref_max),
                               rtol=1e-5, atol=1e-5)
    np.testing.assert_allclose(np.asarray(ori), np.asarray(pos))

    # mode='mean', single path.
    mean_single = jax.block_until_ready(
        spp_forward(x, pool_size=pool_size, mode="mean", single=True))
    np.testing.assert_allclose(np.asarray(mean_single), np.asarray(ref_mean),
                               rtol=1e-5, atol=1e-5)

    # mode='mix' with default (all-ones) weights.
    pos_mix, ori_mix = spp_forward(x, pool_size=pool_size, mode="mix",
                                   single=False)
    pos_mix = jax.block_until_ready(pos_mix)
    ori_mix = jax.block_until_ready(ori_mix)
    s = 1.0 / (1.0 + np.exp(-1.0))
    ref_mix = s * np.asarray(ref_mean) + s * np.asarray(ref_max)
    np.testing.assert_allclose(np.asarray(pos_mix), ref_mix,
                               rtol=1e-5, atol=1e-5)
    np.testing.assert_allclose(np.asarray(ori_mix), ref_mix,
                               rtol=1e-5, atol=1e-5)

    # Multi-block path: grid > 1 with a ragged last channel block.
    N2, C2 = 2, 200
    x2 = jax.random.normal(jax.random.PRNGKey(0), (N2, C2, H, W),
                           dtype=jnp.float32)
    pos2, _ = spp_forward(x2, pool_size=pool_size, mode="max", single=False)
    pos2 = jax.block_until_ready(pos2)
    np.testing.assert_allclose(
        np.asarray(pos2), np.asarray(_ref_spp_single(x2, pool_size, "max")),
        rtol=1e-5, atol=1e-5)
    mean2 = jax.block_until_ready(
        spp_forward(x2, pool_size=pool_size, mode="mean", single=True))
    np.testing.assert_allclose(
        np.asarray(mean2), np.asarray(_ref_spp_single(x2, pool_size, "mean")),
        rtol=1e-5, atol=1e-5)

    print("KERNEL_OK")
</pallas_src>

<mosaic_0001>
module attributes {stable_mosaic.version = 11 : i64} {
  func.func @_spp_pool_kernel(%arg0: i32, %arg1: memref<5x256xf32, #tpu.memory_space<vmem>>, %arg2: memref<5x1xf32, #tpu.memory_space<vmem>>, %arg3: memref<8x256xf32, #tpu.memory_space<vmem>>, %arg4: memref<5x8xf32, #tpu.memory_space<vmem>>) attributes {dimension_semantics = [#tpu.dimension_semantics<parallel>], iteration_bounds = array<i64: 1>, scalar_prefetch = 0 : i64, scratch_operands = 0 : i64, tpu.core_type = #tpu.core_type<tc>, window_params = [{pipeline_mode = #tpu.pipeline_mode<synchronous>, transform_indices = @transform_0, window_bounds = array<i64: 5, 256>}, {pipeline_mode = #tpu.pipeline_mode<synchronous>, transform_indices = @transform_1, window_bounds = array<i64: 5, 1>}, {transform_indices = @transform_2, window_bounds = array<i64: 8, 256>}, {transform_indices = @transform_3, window_bounds = array<i64: 5, 8>}]} {
    %c0 = arith.constant 0 : index
    %c0_0 = arith.constant 0 : index
    %0 = vector.load %arg3[%c0, %c0_0] : memref<8x256xf32, #tpu.memory_space<vmem>>, vector<8x256xf32>
    %c0_1 = arith.constant 0 : index
    %c0_2 = arith.constant 0 : index
    %1 = vector.load %arg1[%c0_1, %c0_2] : memref<5x256xf32, #tpu.memory_space<vmem>>, vector<5x256xf32>
    %2 = vector.extract_strided_slice %1 {offsets = [1, 0], sizes = [1, 256], strides = [1, 1]} : vector<5x256xf32> to vector<1x256xf32>
    %cst = arith.constant 0.000000e+00 : f32
    %3 = vector.broadcast %cst : f32 to vector<1x256xf32>
    %4 = arith.cmpf ogt, %2, %3 : vector<1x256xf32>
    %cst_3 = arith.constant 0xFF800000 : f32
    %5 = vector.shape_cast %4 : vector<1x256xi1> to vector<1x256xi1>
    %6 = vector.broadcast %5 : vector<1x256xi1> to vector<8x256xi1>
    %7 = vector.broadcast %cst_3 : f32 to vector<8x256xf32>
    %8 = arith.select %6, %0, %7 : vector<8x256xi1>, vector<8x256xf32>
    %cst_4 = arith.constant dense<0xFF800000> : vector<8xf32>
    %9 = vector.multi_reduction <maximumf>, %8, %cst_4 [1] : vector<8x256xf32> to vector<8xf32>
    %10 = vector.shape_cast %9 : vector<8xf32> to vector<8x1xf32>
    %11 = vector.extract_strided_slice %1 {offsets = [2, 0], sizes = [1, 256], strides = [1, 1]} : vector<5x256xf32> to vector<1x256xf32>
    %cst_5 = arith.constant 0.000000e+00 : f32
    %12 = vector.broadcast %cst_5 : f32 to vector<1x256xf32>
    %13 = arith.cmpf ogt, %11, %12 : vector<1x256xf32>
    %cst_6 = arith.constant 0xFF800000 : f32
    %14 = vector.shape_cast %13 : vector<1x256xi1> to vector<1x256xi1>
    %15 = vector.broadcast %14 : vector<1x256xi1> to vector<8x256xi1>
    %16 = vector.broadcast %cst_6 : f32 to vector<8x256xf32>
    %17 = arith.select %15, %0, %16 : vector<8x256xi1>, vector<8x256xf32>
    %cst_7 = arith.constant dense<0xFF800000> : vector<8xf32>
    %18 = vector.multi_reduction <maximumf>, %17, %cst_7 [1] : vector<8x256xf32> to vector<8xf32>
    %19 = vector.shape_cast %18 : vector<8xf32> to vector<8x1xf32>
    %20 = vector.extract_strided_slice %1 {offsets = [3, 0], sizes = [1, 256], strides = [1, 1]} : vector<5x256xf32> to vector<1x256xf32>
    %cst_8 = arith.constant 0.000000e+00 : f32
    %21 = vector.broadcast %cst_8 : f32 to vector<1x256xf32>
    %22 = arith.cmpf ogt, %20, %21 : vector<1x256xf32>
    %cst_9 = arith.constant 0xFF800000 : f32
    %23 = vector.shape_cast %22 : vector<1x256xi1> to vector<1x256xi1>
    %24 = vector.broadcast %23 : vector<1x256xi1> to vector<8x256xi1>
    %25 = vector.broadcast %cst_9 : f32 to vector<8x256xf32>
    %26 = arith.select %24, %0, %25 : vector<8x256xi1>, vector<8x256xf32>
    %cst_10 = arith.constant dense<0xFF800000> : vector<8xf32>
    %27 = vector.multi_reduction <maximumf>, %26, %cst_10 [1] : vector<8x256xf32> to vector<8xf32>
    %28 = vector.shape_cast %27 : vector<8xf32> to vector<8x1xf32>
    %29 = vector.extract_strided_slice %1 {offsets = [4, 0], sizes = [1, 256], strides = [1, 1]} : vector<5x256xf32> to vector<1x256xf32>
    %cst_11 = arith.constant 0.000000e+00 : f32
    %30 = vector.broadcast %cst_11 : f32 to vector<1x256xf32>
    %31 = arith.cmpf ogt, %29, %30 : vector<1x256xf32>
    %cst_12 = arith.constant 0xFF800000 : f32
    %32 = vector.shape_cast %31 : vector<1x256xi1> to vector<1x256xi1>
    %33 = vector.broadcast %32 : vector<1x256xi1> to vector<8x256xi1>
    %34 = vector.broadcast %cst_12 : f32 to vector<8x256xf32>
    %35 = arith.select %33, %0, %34 : vector<8x256xi1>, vector<8x256xf32>
    %cst_13 = arith.constant dense<0xFF800000> : vector<8xf32>
    %36 = vector.multi_reduction <maximumf>, %35, %cst_13 [1] : vector<8x256xf32> to vector<8xf32>
    %37 = vector.shape_cast %36 : vector<8xf32> to vector<8x1xf32>
    %38 = arith.maximumf %10, %19 : vector<8x1xf32>
    %39 = arith.maximumf %38, %28 : vector<8x1xf32>
    %40 = arith.maximumf %39, %37 : vector<8x1xf32>
    %41 = tpu.concatenate %40, %10, %19, %28, %37 in 1 : vector<8x1xf32>, vector<8x1xf32>, vector<8x1xf32>, vector<8x1xf32>, vector<8x1xf32> -> vector<8x5xf32>
    %42 = tpu.transpose %41, [1, 0] : vector<8x5xf32> -> vector<5x8xf32>
    %c0_14 = arith.constant 0 : index
    %c0_15 = arith.constant 0 : index
    %43 = vector.load %arg4[%c0_14, %c0_15] : memref<5x8xf32, #tpu.memory_space<vmem>>, vector<5x8xf32>
    tpu.vector_store %arg4[%c0_14, %c0_15], %42 {strides = array<i32>} : memref<5x8xf32, #tpu.memory_space<vmem>>, vector<5x8xf32>,
    return
  }
  func.func @transform_0(%arg0: i32) -> (i32, i32) {
    %c0_i32 = arith.constant 0 : i32
    %c0_i32_0 = arith.constant 0 : i32
    %c0_i32_1 = arith.constant 0 : i32
    return %c0_i32, %c0_i32_0 : i32, i32
  }
  func.func @transform_1(%arg0: i32) -> (i32, i32) {
    %c0_i32 = arith.constant 0 : i32
    %c0_i32_0 = arith.constant 0 : i32
    %c0_i32_1 = arith.constant 0 : i32
    return %c0_i32, %c0_i32_0 : i32, i32
  }
  func.func @transform_2(%arg0: i32) -> (i32, i32) {
    %c0_i32 = arith.constant 0 : i32
    %c0_i32_0 = arith.constant 0 : i32
    return %arg0, %c0_i32 : i32, i32
  }
  func.func @transform_3(%arg0: i32) -> (i32, i32) {
    %c0_i32 = arith.constant 0 : i32
    %c0_i32_0 = arith.constant 0 : i32
    return %c0_i32, %arg0 : i32, i32
  }
}

</mosaic_0001>

<bundles_post_ra>
// kernel: spp_forward.1
= control target key start
LH: loop header
LB: loop body
LE: loop exit
PB: predicated region body
PF: predicated region fallthrough
CT: control target
= control target key end

     0   :  { %v22_v0 = vlaneseq  ;;  %v133_v4 = vmov 0   ;;  %vm85_vm10 = vcmask 7168   ;;  %vm87_vm11 = vcmask 15360   ;;  %s169_s0 = inlined_call_operand.vmem [shape: f32[5,256], index: 0, kind: input, shape index: {}]   ;;  %s170_s1 = inlined_call_operand.vmem [shape: f32[5,1], index: 1, kind: input, shape index: {}]   ;;  %s171_s2 = inlined_call_operand.vmem [shape: f32[8,256], index: 2, kind: input, shape index: {}]   ;;  %s172_s3 = inlined_call_operand.vmem [shape: f32[5,8], index: 3, kind: output, shape index: {}]  }
   0x1   :  { %v16_v1 = vld [vmem:[%s169_s0] sm:$0x1f]  ;;  %v17_v2 = vld [vmem:[%s169_s0 + $0x8] sm:$0x1f]  ;;  %vm89_vm12 = vcmask 23552   ;;  %vm91_vm13 = vcmask 31744  }
   0x2   :  { %vm18_vm0 = vcmp.gt.f32.partialorder %v16_v1, 0.0  ;;  %v23_v3 = vshrl.u32 %v22_v0, 7  ;;  %vm19_vm1 = vcmp.gt.f32.partialorder %v17_v2, 0.0  ;;  %v14_v11 = vld [vmem:[%s171_s2] sm:$0xff]  ;;  %v15_v12 = vld [vmem:[%s171_s2 + $0x8] sm:$0xff]  ;;  %vm125_vm14 = vcmask 61440  }
   0x3   :  { %v20_v5 = vsel %vm18_vm0, 1, %v133_v4  ;;  %v21_v6 = vsel %vm19_vm1, 1, %v133_v4 }
   0x4   :  { %v24_v7 = vsub.s32 1, %v23_v3  ;;  %v54_v8 = vsub.s32 3, %v23_v3  ;;  %v39_v9 = vsub.s32 2, %v23_v3  ;;  %v69_v10 = vsub.s32 4, %v23_v3 }
   0x6   :  { %v25_v13 = vrot.slane %v20_v5, %v24_v7  ;;  %v29_v14 = vrot.slane %v21_v6, %v24_v7  ;;  %v55_v15 = vrot.slane %v20_v5, %v54_v8  ;;  %v59_v16 = vrot.slane %v21_v6, %v54_v8 }
   0x7   :  { %v40_v17 = vrot.slane %v20_v5, %v39_v9  ;;  %v44_v18 = vrot.slane %v21_v6, %v39_v9  ;;  %v70_v19 = vrot.slane %v20_v5, %v69_v10  ;;  %v74_v20 = vrot.slane %v21_v6, %v69_v10 }
   0x8   :  { %vm30_vm2 = vcmp.eq.s32.totalorder %v25_v13, 1  ;;  %vm31_vm3 = vcmp.eq.s32.totalorder %v29_v14, 1  ;;  %vm60_vm4 = vcmp.eq.s32.totalorder %v55_v15, 1  ;;  %vm61_vm5 = vcmp.eq.s32.totalorder %v59_v16, 1 }
   0x9   :  { %v32_v21 = vsel %vm30_vm2, %v14_v11, -inf  ;;  %v33_v22 = vsel %vm31_vm3, %v15_v12, -inf  ;;  %v62_v23 = vsel %vm60_vm4, %v14_v11, -inf  ;;  %v63_v24 = vsel %vm61_vm5, %v15_v12, -inf }
   0xa   :  { %v34_v25 = vmax.f32 %v32_v21, %v33_v22  ;;  %v64_v26 = vmax.f32 %v62_v23, %v63_v24  ;;  %vm45_vm6 = vcmp.eq.s32.totalorder %v40_v17, 1  ;;  %vm46_vm7 = vcmp.eq.s32.totalorder %v44_v18, 1 }
   0xb   :  { %v47_v27 = vsel %vm45_vm6, %v14_v11, -inf  ;;  %v48_v28 = vsel %vm46_vm7, %v15_v12, -inf  ;;  %vm75_vm8 = vcmp.eq.s32.totalorder %v70_v19, 1  ;;  %vm76_vm9 = vcmp.eq.s32.totalorder %v74_v20, 1 }
   0xc   :  { %35 = vmax.xlane.f32.xlu0 %v34_v25  ;;  %65 = vmax.xlane.f32.xlu1 %v64_v26  ;;  %v49_v29 = vmax.f32 %v47_v27, %v48_v28  ;;  %v77_v30 = vsel %vm75_vm8, %v14_v11, -inf  ;;  %v78_v31 = vsel %vm76_vm9, %v15_v12, -inf }
   0xd   :  { %v79_v32 = vmax.f32 %v77_v30, %v78_v31 }
  0x10   :  { %50 = vmax.xlane.f32.xlu0 %v49_v29  ;;  %80 = vmax.xlane.f32.xlu1 %v79_v32 }
  0x99   :  { %v36_v33 = vpop.xlane.xlu0 %35  ;;  %v66_v34 = vpop.xlane.xlu1 %65 }
  0x9d   :  { %v51_v35 = vpop.xlane.xlu0 %50  ;;  %v81_v37 = vpop.xlane.xlu1 %80 }
  0x9e   :  { %v82_v36 = vmax.f32 %v36_v33, %v51_v35 }
  0xa0   :  { %v83_v38 = vmax.f32 %v82_v36, %v66_v34 }
  0xa2   :  { %v84_v39 = vmax.f32 %v83_v38, %v81_v37 }
  0xa4   :  { %v86_v40 = vsel %vm85_vm10, %v84_v39, %v36_v33 }
  0xa5   :  { %v88_v41 = vsel %vm87_vm11, %v86_v40, %v51_v35 }
  0xa6   :  { %v90_v42 = vsel %vm89_vm12, %v88_v41, %v66_v34 }
  0xa7   :  { %v92_v43 = vsel %vm91_vm13, %v90_v42, %v81_v37 }
  0xa8   :  { %93 = vxpose.xlu0.b32.start.end [1/1] (short) (narrow) %v92_v43, 8 }
 0x128   :  { %v109_v44 = vpop.trf.xlu0 }
 0x129   :  { %126 = vst.msk [vmem:[%s172_s3] sm:$0x1f] %vm125_vm14, %v109_v44 }

</bundles_post_ra>
